<compile_context>
chip_gen: v7x
topology: tpu7x:2x2x1
jax: 0.10.0
libtpu: 0.0.40
codegen_flags: <defaults>
</compile_context>

<pallas_src>
import functools
import math

import jax
import jax.numpy as jnp
from jax.experimental import pallas as pl
from jax.experimental.pallas import tpu as pltpu

_PAD = 128            # every hidden layer width padded to the lane width
_NUM_CLASSES = 5
# NOTE: -1e30 is only safe because logits stay f32 (preferred_element_type);
# do not cast the accumulator of the final layer to bf16.
_NEG_MASK = -1e30
_COMPUTE_DTYPE = jnp.bfloat16   # bf16 on v5e/v6e/v7x; accumulation stays f32

_LAYER_DIMS = {
    "in16_1": (16, 32),
    "in16_2": (32, 64),
    "in16_3": (64, 128),
    "in32_1": (32, 64),
    "in32_2": (64, 128),
    "in64":   (64, 128),
    "shrink1": (128, 64),
    "shrink2": (64, 16),
    "shrink3": (16, 5),
}

_BRANCH_LAYERS = {
    16: ["in16_1", "in16_2", "in16_3", "shrink1", "shrink2", "shrink3"],
    32: ["in32_1", "in32_2", "shrink1", "shrink2", "shrink3"],
    64: ["in64", "shrink1", "shrink2", "shrink3"],
}


# ----------------------------------------------------------------------------
# Pallas kernel: fused MLP (Linear+ReLU chain) ending in Linear + softmax.
# x_ref: (TILE_B, n_in) input dtype; w_ref: (L, 128, 128) bf16;
# b_ref: (L, 1, 128) f32 (padded logit lanes pre-masked to -1e30 in the last
# layer's bias); o_ref: (TILE_B, 128) bf16 (only first 5 lanes meaningful).
# ----------------------------------------------------------------------------
def _mlp_softmax_kernel(n_layers, n_in, compute_dtype, x_ref, w_ref, b_ref,
                        o_ref):
    h = x_ref[...].astype(compute_dtype)
    acc = None
    for i in range(n_layers):
        if i == 0:
            # Contract only the real n_in rows of the padded first weight
            # (small-K matmul on the MXU; avoids lane-padding the input).
            w = w_ref[0][:n_in, :]
        else:
            w = w_ref[i]
        acc = jnp.dot(h, w, preferred_element_type=jnp.float32) + b_ref[i]
        if i < n_layers - 1:
            # Zero-padded lanes stay zero: padded W rows/cols and biases are
            # zero and ReLU(0) == 0.
            h = jnp.maximum(acc, 0.0).astype(compute_dtype)

    # Softmax over the final (f32) logits. Padded lanes carry a -1e30 bias
    # baked into b_ref[last], so exp() drives them to exactly 0.
    logits = acc
    m = jnp.max(logits, axis=-1, keepdims=True)
    e = jnp.exp(logits - m)
    denom = jnp.sum(e, axis=-1, keepdims=True)
    o_ref[...] = (e * pl.reciprocal(denom, approx=True)).astype(o_ref.dtype)


# ----------------------------------------------------------------------------
# Parameter init (mirrors ThresNet.__init__ / _weights_init):
# weights kaiming_normal_, biases PyTorch default uniform(+-1/sqrt(fan_in)).
# ----------------------------------------------------------------------------
def init_thresnet_params(key):
    params = {}
    for name, (fan_in, fan_out) in _LAYER_DIMS.items():
        key, kw, kb = jax.random.split(key, 3)
        std = math.sqrt(2.0 / fan_in)
        w = std * jax.random.normal(kw, (fan_in, fan_out), dtype=jnp.float32)
        bound = 1.0 / math.sqrt(fan_in)
        b = jax.random.uniform(kb, (1, fan_out), dtype=jnp.float32,
                               minval=-bound, maxval=bound)
        params[name + "_w"] = w           # stored as (in, out): y = x @ W + b
        params[name + "_b"] = b
    return params


def pack_thresnet_params(params, compute_dtype=_COMPUTE_DTYPE):
    """Pre-pack each input-size branch into (W: (L,128,128), B: (L,1,128))."""
    packed = {}
    for n, layer_names in _BRANCH_LAYERS.items():
        L = len(layer_names)
        W = jnp.zeros((L, _PAD, _PAD), dtype=compute_dtype)
        Bv = jnp.zeros((L, 1, _PAD), dtype=jnp.float32)
        for i, name in enumerate(layer_names):
            w = params[name + "_w"]
            b = params[name + "_b"]
            W = W.at[i, :w.shape[0], :w.shape[1]].set(w.astype(compute_dtype))
            Bv = Bv.at[i, :, :b.shape[1]].set(b)
        # Bake the logit-lane mask into the last layer's bias: padded weight
        # columns already contribute 0, so the bias alone pins padded logits
        # at -1e30 and the kernel needs no iota/where.
        Bv = Bv.at[L - 1, 0, _NUM_CLASSES:].set(_NEG_MASK)
        packed[n] = (W, Bv, compute_dtype)
    return packed


def _choose_tile_b(batch):
    """Batch tile: multiple of 8, cap 512; for big batches keep >=8 grid steps
    so the pipeline engages and v7x's 2 TensorCores each get >=4 steps."""
    b8 = ((batch + 7) // 8) * 8
    if b8 <= 512:
        return b8                               # single tile
    tile = min(512, max(128, b8 // 8))
    return ((tile + 7) // 8) * 8


# ----------------------------------------------------------------------------
# Wrapper reproducing ThresNet.forward. Accepts a single vector (16/32/64,)
# -> (5,), or a batch (B, 16/32/64) -> (B, 5) as the performance path.
# ----------------------------------------------------------------------------
def thresnet_forward(packed_params, x):
    squeeze = (x.ndim == 1)
    xb = x[None, :] if squeeze else x
    n = xb.shape[1]
    if n not in _BRANCH_LAYERS:
        raise ValueError(f"ThresNet expects input length 16, 32 or 64, got {n}")

    W, Bv, compute_dtype = packed_params[n]
    L = W.shape[0]
    B = xb.shape[0]

    tile_b = _choose_tile_b(B)
    b_pad = ((B + tile_b - 1) // tile_b) * tile_b
    if b_pad != B:
        # Only the batch dim is padded; the lane dim stays at the real width n,
        # so there is no (B_pad, 128) HBM round trip for the input.
        xb = jnp.pad(xb, ((0, b_pad - B), (0, 0)))

    grid = (b_pad // tile_b,)

    w_bytes = W.size * jnp.dtype(compute_dtype).itemsize
    cost = pl.CostEstimate(
        flops=int(2 * b_pad * L * _PAD * _PAD),
        transcendentals=int(b_pad * (_PAD + 1)),
        bytes_accessed=int(xb.size * xb.dtype.itemsize + w_bytes + Bv.size * 4
                           + b_pad * _PAD * 2),
    )

    kernel = functools.partial(_mlp_softmax_kernel, L, n, compute_dtype)

    out = pl.pallas_call(
        kernel,
        out_shape=jax.ShapeDtypeStruct((b_pad, _PAD), jnp.bfloat16),
        grid_spec=pltpu.PrefetchScalarGridSpec(
            num_scalar_prefetch=0,
            grid=grid,
            in_specs=[
                # batch tile of the raw input (last block dim == full dim n)
                pl.BlockSpec((tile_b, n), lambda i: (i, 0)),
                # packed weights / biases: constant block index -> loaded once,
                # VMEM-resident across all batch tiles.
                pl.BlockSpec((L, _PAD, _PAD), lambda i: (0, 0, 0)),
                pl.BlockSpec((L, 1, _PAD), lambda i: (0, 0, 0)),
            ],
            out_specs=pl.BlockSpec((tile_b, _PAD), lambda i: (i, 0)),
        ),
        compiler_params=pltpu.CompilerParams(
            dimension_semantics=("parallel",)),
        cost_estimate=cost,
    )(xb, W, Bv)

    out = out[:B, :_NUM_CLASSES].astype(jnp.float32)
    return out[0] if squeeze else out


# ----------------------------------------------------------------------------
# Pure-JAX reference (same math as the PyTorch module) for validation.
# ----------------------------------------------------------------------------
def thresnet_reference(params, x):
    layer_names = _BRANCH_LAYERS[x.shape[0]]
    h = x.reshape(1, -1).astype(jnp.float32)
    for i, name in enumerate(layer_names):
        h = h @ params[name + "_w"] + params[name + "_b"]
        if i < len(layer_names) - 1:
            h = jnp.maximum(h, 0.0)
    return jax.nn.softmax(h, axis=-1)[0]


if __name__ == "__main__":
    key = jax.random.PRNGKey(0)
    k_param, k_x16, k_x64, k_xb = jax.random.split(key, 4)

    params = init_thresnet_params(k_param)
    packed = pack_thresnet_params(params)

    # bf16 compute + approx-reciprocal softmax + bf16 output => accepted
    # approximation vs. the f32 reference.
    atol = 2.5e-2

    # ---- single-vector forward, 16-wide branch ----------------------------
    x16 = jax.random.normal(k_x16, (16,), dtype=jnp.float32)
    out16 = jax.block_until_ready(thresnet_forward(packed, x16))
    assert out16.shape == (_NUM_CLASSES,)
    assert bool(jnp.isfinite(out16).all())
    assert abs(float(jnp.sum(out16)) - 1.0) < 3e-2
    ref16 = thresnet_reference(params, x16)
    assert bool(jnp.allclose(out16, ref16, atol=atol)), (out16, ref16)

    # ---- single-vector forward, 64-wide branch ----------------------------
    x64 = jax.random.normal(k_x64, (64,), dtype=jnp.float32)
    out64 = jax.block_until_ready(thresnet_forward(packed, x64))
    assert out64.shape == (_NUM_CLASSES,)
    ref64 = thresnet_reference(params, x64)
    assert bool(jnp.allclose(out64, ref64, atol=atol)), (out64, ref64)

    # ---- batched forward (performance path) --------------------------------
    xb = jax.random.normal(k_xb, (256, 16), dtype=jnp.float32)
    outb = jax.block_until_ready(thresnet_forward(packed, xb))
    assert outb.shape == (256, _NUM_CLASSES)
    assert bool(jnp.isfinite(outb).all())
    assert bool(jnp.allclose(jnp.sum(outb, axis=-1), 1.0, atol=3e-2))

    print("KERNEL_OK")
</pallas_src>

<mosaic_0001>
module attributes {stable_mosaic.version = 11 : i64} {
  func.func @_mlp_softmax_kernel(%arg0: i32, %arg1: memref<8x16xf32, #tpu.memory_space<vmem>>, %arg2: memref<6x128x128xbf16, #tpu.memory_space<vmem>>, %arg3: memref<6x1x128xf32, #tpu.memory_space<vmem>>, %arg4: memref<8x128xbf16, #tpu.memory_space<vmem>>) attributes {dimension_semantics = [#tpu.dimension_semantics<parallel>], iteration_bounds = array<i64: 1>, scalar_prefetch = 0 : i64, scratch_operands = 0 : i64, tpu.core_type = #tpu.core_type<tc>, window_params = [{transform_indices = @transform_0, window_bounds = array<i64: 8, 16>}, {pipeline_mode = #tpu.pipeline_mode<synchronous>, transform_indices = @transform_1, window_bounds = array<i64: 6, 128, 128>}, {pipeline_mode = #tpu.pipeline_mode<synchronous>, transform_indices = @transform_2, window_bounds = array<i64: 6, 1, 128>}, {transform_indices = @transform_3, window_bounds = array<i64: 8, 128>}]} {
    %c0 = arith.constant 0 : index
    %c0_0 = arith.constant 0 : index
    %0 = vector.load %arg1[%c0, %c0_0] : memref<8x16xf32, #tpu.memory_space<vmem>>, vector<8x16xf32>
    %1 = arith.truncf %0 : vector<8x16xf32> to vector<8x16xbf16>
    %c0_1 = arith.constant 0 : index
    %c0_2 = arith.constant 0 : index
    %c0_3 = arith.constant 0 : index
    %2 = vector.load %arg2[%c0_1, %c0_2, %c0_3] : memref<6x128x128xbf16, #tpu.memory_space<vmem>>, vector<1x128x128xbf16>
    %3 = vector.shape_cast %2 : vector<1x128x128xbf16> to vector<128x128xbf16>
    %4 = vector.extract_strided_slice %3 {offsets = [0, 0], sizes = [16, 128], strides = [1, 1]} : vector<128x128xbf16> to vector<16x128xbf16>
    %cst = arith.constant dense<0.000000e+00> : vector<8x128xf32>
    %5 = tpu.matmul %1, %4, %cst {dimension_numbers = #tpu.dot_dimension_numbers<[1], [0], [0], [1], [0, 0, 1, 1], [], []>} : vector<8x16xbf16>, vector<16x128xbf16>, vector<8x128xf32> -> vector<8x128xf32>
    %c0_4 = arith.constant 0 : index
    %c0_5 = arith.constant 0 : index
    %c0_6 = arith.constant 0 : index
    %6 = vector.load %arg3[%c0_4, %c0_5, %c0_6] : memref<6x1x128xf32, #tpu.memory_space<vmem>>, vector<1x1x128xf32>
    %7 = vector.shape_cast %6 : vector<1x1x128xf32> to vector<1x128xf32>
    %8 = vector.broadcast %7 : vector<1x128xf32> to vector<8x128xf32>
    %9 = arith.addf %5, %8 : vector<8x128xf32>
    %cst_7 = arith.constant 0.000000e+00 : f32
    %10 = vector.broadcast %cst_7 : f32 to vector<8x128xf32>
    %11 = arith.maximumf %9, %10 : vector<8x128xf32>
    %12 = arith.truncf %11 : vector<8x128xf32> to vector<8x128xbf16>
    %c1 = arith.constant 1 : index
    %c0_8 = arith.constant 0 : index
    %c0_9 = arith.constant 0 : index
    %13 = vector.load %arg2[%c1, %c0_8, %c0_9] : memref<6x128x128xbf16, #tpu.memory_space<vmem>>, vector<1x128x128xbf16>
    %14 = vector.shape_cast %13 : vector<1x128x128xbf16> to vector<128x128xbf16>
    %cst_10 = arith.constant dense<0.000000e+00> : vector<8x128xf32>
    %15 = tpu.matmul %12, %14, %cst_10 {dimension_numbers = #tpu.dot_dimension_numbers<[1], [0], [0], [1], [0, 0, 1, 1], [], []>} : vector<8x128xbf16>, vector<128x128xbf16>, vector<8x128xf32> -> vector<8x128xf32>
    %c1_11 = arith.constant 1 : index
    %c0_12 = arith.constant 0 : index
    %c0_13 = arith.constant 0 : index
    %16 = vector.load %arg3[%c1_11, %c0_12, %c0_13] : memref<6x1x128xf32, #tpu.memory_space<vmem>>, vector<1x1x128xf32>
    %17 = vector.shape_cast %16 : vector<1x1x128xf32> to vector<1x128xf32>
    %18 = vector.broadcast %17 : vector<1x128xf32> to vector<8x128xf32>
    %19 = arith.addf %15, %18 : vector<8x128xf32>
    %cst_14 = arith.constant 0.000000e+00 : f32
    %20 = vector.broadcast %cst_14 : f32 to vector<8x128xf32>
    %21 = arith.maximumf %19, %20 : vector<8x128xf32>
    %22 = arith.truncf %21 : vector<8x128xf32> to vector<8x128xbf16>
    %c2 = arith.constant 2 : index
    %c0_15 = arith.constant 0 : index
    %c0_16 = arith.constant 0 : index
    %23 = vector.load %arg2[%c2, %c0_15, %c0_16] : memref<6x128x128xbf16, #tpu.memory_space<vmem>>, vector<1x128x128xbf16>
    %24 = vector.shape_cast %23 : vector<1x128x128xbf16> to vector<128x128xbf16>
    %cst_17 = arith.constant dense<0.000000e+00> : vector<8x128xf32>
    %25 = tpu.matmul %22, %24, %cst_17 {dimension_numbers = #tpu.dot_dimension_numbers<[1], [0], [0], [1], [0, 0, 1, 1], [], []>} : vector<8x128xbf16>, vector<128x128xbf16>, vector<8x128xf32> -> vector<8x128xf32>
    %c2_18 = arith.constant 2 : index
    %c0_19 = arith.constant 0 : index
    %c0_20 = arith.constant 0 : index
    %26 = vector.load %arg3[%c2_18, %c0_19, %c0_20] : memref<6x1x128xf32, #tpu.memory_space<vmem>>, vector<1x1x128xf32>
    %27 = vector.shape_cast %26 : vector<1x1x128xf32> to vector<1x128xf32>
    %28 = vector.broadcast %27 : vector<1x128xf32> to vector<8x128xf32>
    %29 = arith.addf %25, %28 : vector<8x128xf32>
    %cst_21 = arith.constant 0.000000e+00 : f32
    %30 = vector.broadcast %cst_21 : f32 to vector<8x128xf32>
    %31 = arith.maximumf %29, %30 : vector<8x128xf32>
    %32 = arith.truncf %31 : vector<8x128xf32> to vector<8x128xbf16>
    %c3 = arith.constant 3 : index
    %c0_22 = arith.constant 0 : index
    %c0_23 = arith.constant 0 : index
    %33 = vector.load %arg2[%c3, %c0_22, %c0_23] : memref<6x128x128xbf16, #tpu.memory_space<vmem>>, vector<1x128x128xbf16>
    %34 = vector.shape_cast %33 : vector<1x128x128xbf16> to vector<128x128xbf16>
    %cst_24 = arith.constant dense<0.000000e+00> : vector<8x128xf32>
    %35 = tpu.matmul %32, %34, %cst_24 {dimension_numbers = #tpu.dot_dimension_numbers<[1], [0], [0], [1], [0, 0, 1, 1], [], []>} : vector<8x128xbf16>, vector<128x128xbf16>, vector<8x128xf32> -> vector<8x128xf32>
    %c3_25 = arith.constant 3 : index
    %c0_26 = arith.constant 0 : index
    %c0_27 = arith.constant 0 : index
    %36 = vector.load %arg3[%c3_25, %c0_26, %c0_27] : memref<6x1x128xf32, #tpu.memory_space<vmem>>, vector<1x1x128xf32>
    %37 = vector.shape_cast %36 : vector<1x1x128xf32> to vector<1x128xf32>
    %38 = vector.broadcast %37 : vector<1x128xf32> to vector<8x128xf32>
    %39 = arith.addf %35, %38 : vector<8x128xf32>
    %cst_28 = arith.constant 0.000000e+00 : f32
    %40 = vector.broadcast %cst_28 : f32 to vector<8x128xf32>
    %41 = arith.maximumf %39, %40 : vector<8x128xf32>
    %42 = arith.truncf %41 : vector<8x128xf32> to vector<8x128xbf16>
    %c4 = arith.constant 4 : index
    %c0_29 = arith.constant 0 : index
    %c0_30 = arith.constant 0 : index
    %43 = vector.load %arg2[%c4, %c0_29, %c0_30] : memref<6x128x128xbf16, #tpu.memory_space<vmem>>, vector<1x128x128xbf16>
    %44 = vector.shape_cast %43 : vector<1x128x128xbf16> to vector<128x128xbf16>
    %cst_31 = arith.constant dense<0.000000e+00> : vector<8x128xf32>
    %45 = tpu.matmul %42, %44, %cst_31 {dimension_numbers = #tpu.dot_dimension_numbers<[1], [0], [0], [1], [0, 0, 1, 1], [], []>} : vector<8x128xbf16>, vector<128x128xbf16>, vector<8x128xf32> -> vector<8x128xf32>
    %c4_32 = arith.constant 4 : index
    %c0_33 = arith.constant 0 : index
    %c0_34 = arith.constant 0 : index
    %46 = vector.load %arg3[%c4_32, %c0_33, %c0_34] : memref<6x1x128xf32, #tpu.memory_space<vmem>>, vector<1x1x128xf32>
    %47 = vector.shape_cast %46 : vector<1x1x128xf32> to vector<1x128xf32>
    %48 = vector.broadcast %47 : vector<1x128xf32> to vector<8x128xf32>
    %49 = arith.addf %45, %48 : vector<8x128xf32>
    %cst_35 = arith.constant 0.000000e+00 : f32
    %50 = vector.broadcast %cst_35 : f32 to vector<8x128xf32>
    %51 = arith.maximumf %49, %50 : vector<8x128xf32>
    %52 = arith.truncf %51 : vector<8x128xf32> to vector<8x128xbf16>
    %c5 = arith.constant 5 : index
    %c0_36 = arith.constant 0 : index
    %c0_37 = arith.constant 0 : index
    %53 = vector.load %arg2[%c5, %c0_36, %c0_37] : memref<6x128x128xbf16, #tpu.memory_space<vmem>>, vector<1x128x128xbf16>
    %54 = vector.shape_cast %53 : vector<1x128x128xbf16> to vector<128x128xbf16>
    %cst_38 = arith.constant dense<0.000000e+00> : vector<8x128xf32>
    %55 = tpu.matmul %52, %54, %cst_38 {dimension_numbers = #tpu.dot_dimension_numbers<[1], [0], [0], [1], [0, 0, 1, 1], [], []>} : vector<8x128xbf16>, vector<128x128xbf16>, vector<8x128xf32> -> vector<8x128xf32>
    %c5_39 = arith.constant 5 : index
    %c0_40 = arith.constant 0 : index
    %c0_41 = arith.constant 0 : index
    %56 = vector.load %arg3[%c5_39, %c0_40, %c0_41] : memref<6x1x128xf32, #tpu.memory_space<vmem>>, vector<1x1x128xf32>
    %57 = vector.shape_cast %56 : vector<1x1x128xf32> to vector<1x128xf32>
    %58 = vector.broadcast %57 : vector<1x128xf32> to vector<8x128xf32>
    %59 = arith.addf %55, %58 : vector<8x128xf32>
    %cst_42 = arith.constant dense<0xFF800000> : vector<8xf32>
    %60 = vector.multi_reduction <maximumf>, %59, %cst_42 [1] : vector<8x128xf32> to vector<8xf32>
    %61 = vector.shape_cast %60 : vector<8xf32> to vector<8x1xf32>
    %62 = vector.broadcast %61 : vector<8x1xf32> to vector<8x128xf32>
    %63 = arith.subf %59, %62 : vector<8x128xf32>
    %64 = math.exp %63 : vector<8x128xf32>
    %cst_43 = arith.constant dense<0.000000e+00> : vector<8xf32>
    %65 = vector.multi_reduction <add>, %64, %cst_43 [1] : vector<8x128xf32> to vector<8xf32>
    %66 = vector.shape_cast %65 : vector<8xf32> to vector<8x1xf32>
    %67 = tpu.reciprocal %66 {approx = true} : vector<8x1xf32> -> vector<8x1xf32>
    %68 = vector.broadcast %67 : vector<8x1xf32> to vector<8x128xf32>
    %69 = arith.mulf %64, %68 : vector<8x128xf32>
    %70 = arith.truncf %69 : vector<8x128xf32> to vector<8x128xbf16>
    %c0_44 = arith.constant 0 : index
    %c0_45 = arith.constant 0 : index
    %71 = vector.load %arg4[%c0_44, %c0_45] : memref<8x128xbf16, #tpu.memory_space<vmem>>, vector<8x128xbf16>
    tpu.vector_store %arg4[%c0_44, %c0_45], %70 {strides = array<i32>} : memref<8x128xbf16, #tpu.memory_space<vmem>>, vector<8x128xbf16>,
    return
  }
  func.func @transform_0(%arg0: i32) -> (i32, i32) {
    %c0_i32 = arith.constant 0 : i32
    %c0_i32_0 = arith.constant 0 : i32
    return %arg0, %c0_i32 : i32, i32
  }
  func.func @transform_1(%arg0: i32) -> (i32, i32, i32) {
    %c0_i32 = arith.constant 0 : i32
    %c0_i32_0 = arith.constant 0 : i32
    %c0_i32_1 = arith.constant 0 : i32
    %c0_i32_2 = arith.constant 0 : i32
    return %c0_i32, %c0_i32_0, %c0_i32_1 : i32, i32, i32
  }
  func.func @transform_2(%arg0: i32) -> (i32, i32, i32) {
    %c0_i32 = arith.constant 0 : i32
    %c0_i32_0 = arith.constant 0 : i32
    %c0_i32_1 = arith.constant 0 : i32
    %c0_i32_2 = arith.constant 0 : i32
    return %c0_i32, %c0_i32_0, %c0_i32_1 : i32, i32, i32
  }
  func.func @transform_3(%arg0: i32) -> (i32, i32) {
    %c0_i32 = arith.constant 0 : i32
    %c0_i32_0 = arith.constant 0 : i32
    return %arg0, %c0_i32 : i32, i32
  }
}

</mosaic_0001>

<bundles_post_ra>
// kernel: tpu_custom_call.1
= control target key start
LH: loop header
LB: loop body
LE: loop exit
PB: predicated region body
PF: predicated region fallthrough
CT: control target
= control target key end

     0   :  { %8 = vsyncpa [#allocation3], 0  ;;  %s1176_s0 = inlined_call_operand.hbm [shape: f32[8,16], index: 0, kind: input, shape index: {}]   ;;  %s1177_s1 = inlined_call_operand.hbm [shape: bf16[6,128,128], index: 1, kind: input, shape index: {}]   ;;  %s1178_s2 = inlined_call_operand.vmem [shape: f32[6,1,128], index: 2, kind: input, shape index: {}]   ;;  %s1179_s3 = inlined_call_operand.hbm [shape: bf16[8,128], index: 3, kind: output, shape index: {}]  }
   0x1   :  { %9 = vsyncpa [#allocation6], 0 }
   0x2   :  { %10 = vsyncpa [#allocation4], 0  ;;  %s1035_s12 = smov [#allocation2]   ;;  %s1036_s14 = smov [#allocation5]  }
   0x3   :  { %s17_s13 = sshll.u32 %s1035_s12, 4  ;;  %s26_s15 = sshll.u32 %s1036_s14, 4  ;;  %s18_s13 = int_to_ptr.vmem [resolvable:$true] %s17_s13  ;;  %s1062_s15 = int_to_ptr.vmem [resolvable:$true] %s26_s15 }
   0x4   :  { %s963_s18 = scalar_lea.hbm %s1176_s0, 128 }
   0x5   :  { %p964_p0 = scmp.ne.s32.totalorder %s1176_s0, %s963_s18  ;;  %p967_p1 = scmp.lt.u32.totalorder %s963_s18, %s1176_s0 }
   0x7   :  { %p969_p2 = pnand %p967_p1, %p964_p0 }
   0x9   :  { %972 = shalt.err (!%p969_p2)
}
   0xa   :  { %s973_s23 = scalar_lea.vmem %s18_s13, 128  ;;  %p978_p4 = scmp.lt.s32.totalorder %s18_s13, %s18_s13 }
   0xb   :  { %p974_p3 = scmp.ne.s32.totalorder %s18_s13, %s973_s23  ;;  %p979_p5 = scmp.lt.s32.totalorder %s973_s23, %s973_s23 }
   0xd   :  { %p980_p6 = por %p979_p5, %p978_p4 }
   0xf   :  { %p981_p7 = pnand %p980_p6, %p974_p3 }
  0x11   :  { %984 = shalt.err (!%p981_p7)
}
  0x12   :  { %20 = dma.hbm_to_vmem [thread:$0]  %s1176_s0, 128, %s18_s13, [#allocation3]  }
  0x13   :  { %s985_s28 = scalar_lea.hbm %s1177_s1, 6144 }
  0x14   :  { %p986_p8 = scmp.ne.s32.totalorder %s1177_s1, %s985_s28  ;;  %p989_p9 = scmp.lt.u32.totalorder %s985_s28, %s1177_s1 }
  0x16   :  { %p991_p10 = pnand %p989_p9, %p986_p8 }
  0x18   :  { %994 = shalt.err (!%p991_p10)
}
  0x19   :  { %s995_s6 = scalar_lea.vmem %s1062_s15, 6144  ;;  %p1000_p12 = scmp.lt.s32.totalorder %s1062_s15, %s1062_s15 }
  0x1a   :  { %p996_p11 = scmp.ne.s32.totalorder %s1062_s15, %s995_s6  ;;  %p1001_p13 = scmp.lt.s32.totalorder %s995_s6, %s995_s6 }
  0x1c   :  { %p1002_p0 = por %p1001_p13, %p1000_p12 }
  0x1e   :  { %p1003_p1 = pnand %p1002_p0, %p996_p11 }
  0x20   :  { %1006 = shalt.err (!%p1003_p1)
}
  0x21   :  { %s1037_s0 = smov 64   ;;  %s1038_s7 = smov 4  }
  0x22   :  { %32 = dma.hbm_to_vmem [thread:$0]  %s1177_s1, 6144, %s1062_s15, [#allocation6], %s1037_s0, %s1037_s0, %s1038_s7  }
  0x23   :  { %1029 = dma.done.wait [#allocation3], 128  }
  0x24   :  { %1030 = vsyncadd [#allocation3], 4294967168 }
  0x25   :  { %1031 = dma.done.wait [#allocation6], 6144  }
  0x26   :  { %1032 = vsyncadd [#allocation6], 4294961152  ;;  %v1039_v0 = vmov 0.0   ;;  %vm1040_vm0 = vmmov 0   ;;  %v918_v1 = vld [vmem:[#allocation5] sm:$0xff]   ;;  %v42_v2 = vld [vmem:[#allocation2] sm:$0xff] }
  0x27   :  { %805 = vmatprep.subr.bf16.mxu0 %v1039_v0  ;;  %807 = vmatprep.mubr.msk.bf16.mxu0 %vm1040_vm0, %v1039_v0  ;;  %v43_v3 = vpack.c.bf16 %v42_v2, %v42_v2  ;;  %vm59_vm1 = vcmask 130048   ;;  %v919_v4 = vld [vmem:[#allocation5 + $0x40] sm:$0xff]   ;;  %v920_v5 = vld [vmem:[#allocation5 + $0x48] sm:$0xff]   ;;  %v921_v6 = vld [vmem:[#allocation5 + $0x50] sm:$0xff]   ;;  %s1041_s21 = smov [#allocation7]  }
  0x28   :  { %811 = vmatprep.subr.bf16.mxu1 %v1039_v0  ;;  %827 = vmatprep.mubr.msk.bf16.mxu1 %vm1040_vm0, %v1039_v0  ;;  %v922_v7 = vld [vmem:[#allocation5 + $0x58] sm:$0xff]   ;;  %v923_v8 = vld [vmem:[#allocation5 + $0x60] sm:$0xff]   ;;  %v924_v9 = vld [vmem:[#allocation5 + $0x68] sm:$0xff]   ;;  %s695_s22 = sshll.u32 %s1041_s21, 4  ;;  %s696_s22 = int_to_ptr.vmem [resolvable:$true] %s695_s22 }
  0x29   :  { %806 = vmatpush3.bf16.msra.mxu0 %v918_v1  ;;  %812 = vmatpush3.bf16.msra.mxu1 %v919_v4  ;;  %v925_v10 = vld [vmem:[#allocation5 + $0x70] sm:$0xff]   ;;  %v926_v11 = vld [vmem:[#allocation5 + $0x78] sm:$0xff]   ;;  %v927_v12 = vld [vmem:[#allocation5 + $0x80] sm:$0xff]   ;;  %p1012_p3 = scmp.lt.s32.totalorder %s696_s22, %s696_s22 }
  0x2a   :  { %831 = vmatprep.subr.bf16.mxu0 %v1039_v0  ;;  %813 = vmatprep.subr.bf16.mxu1 %v1039_v0  ;;  %v928_v13 = vld [vmem:[#allocation5 + $0x88] sm:$0xff]   ;;  %v929_v14 = vld [vmem:[#allocation5 + $0x90] sm:$0xff]   ;;  %v930_v15 = vld [vmem:[#allocation5 + $0x98] sm:$0xff]  }
  0x2b   :  { %v931_v16 = vld [vmem:[#allocation5 + $0xa0] sm:$0xff]   ;;  %v932_v17 = vld [vmem:[#allocation5 + $0xa8] sm:$0xff]   ;;  %v705_v18 = vld [vmem:[%s1178_s2] ss:$0 sm:$0xff] }
  0x2c   :  { %808 = vmatmul.mubr.msk.bf16.vlgmr.msra.gmra.mrb[0].mxu0 %vm59_vm1, %v43_v3  ;;  %v933_v26 = vld [vmem:[#allocation5 + $0xb0] sm:$0xff]   ;;  %v934_v27 = vld [vmem:[#allocation5 + $0xb8] sm:$0xff]   ;;  %v935_v28 = vld [vmem:[#allocation5 + $0xc0] sm:$0xff]  }
  0x2d   :  { %847 = vmatprep.mubr.msk.bf16.mxu0 %vm1040_vm0, %v1039_v0  ;;  %814 = vmatpush3.bf16.msra.mxu1 %v920_v5  ;;  %v936_v29 = vld [vmem:[#allocation5 + $0xc8] sm:$0xff]   ;;  %v937_v30 = vld [vmem:[#allocation5 + $0xd0] sm:$0xff]   ;;  %v938_v31 = vld [vmem:[#allocation5 + $0xd8] sm:$0xff]  }
  0x2e   :  { %815 = vmatprep.subr.bf16.mxu1 %v1039_v0  ;;  %832 = vmatpush3.bf16.msra.mxu0 %v927_v12  ;;  %v939_v32 = vld [vmem:[#allocation5 + $0xe0] sm:$0xff]   ;;  %v940_v33 = vld [vmem:[#allocation5 + $0xe8] sm:$0xff]   ;;  %v709_v34 = vld [vmem:[%s1178_s2 + $0x1] ss:$0 sm:$0xff] }
  0x2f   :  { %833 = vmatprep.subr.bf16.mxu0 %v1039_v0  ;;  %v941_v42 = vld [vmem:[#allocation5 + $0xf0] sm:$0xff]   ;;  %v942_v43 = vld [vmem:[#allocation5 + $0xf8] sm:$0xff]   ;;  %v943_v44 = vld [vmem:[#allocation5 + $0x100] sm:$0xff]  }
  0x30   :  { %v944_v45 = vld [vmem:[#allocation5 + $0x108] sm:$0xff]   ;;  %v945_v46 = vld [vmem:[#allocation5 + $0x110] sm:$0xff]   ;;  %v946_v47 = vld [vmem:[#allocation5 + $0x118] sm:$0xff]  }
  0x31   :  { %816 = vmatpush3.bf16.msra.mxu1 %v921_v6  ;;  %v947_v48 = vld [vmem:[#allocation5 + $0x120] sm:$0xff]   ;;  %v948_v49 = vld [vmem:[#allocation5 + $0x128] sm:$0xff]   ;;  %v719_v50 = vld [vmem:[%s1178_s2 + $0x2] ss:$0 sm:$0xff] }
  0x32   :  { %817 = vmatprep.subr.bf16.mxu1 %v1039_v0  ;;  %834 = vmatpush3.bf16.msra.mxu0 %v928_v13  ;;  %v949_v58 = vld [vmem:[#allocation5 + $0x130] sm:$0xff]   ;;  %v950_v59 = vld [vmem:[#allocation5 + $0x138] sm:$0xff]   ;;  %v951_v60 = vld [vmem:[#allocation5 + $0x140] sm:$0xff]  }
  0x33   :  { %835 = vmatprep.subr.bf16.mxu0 %v1039_v0  ;;  %v952_v61 = vld [vmem:[#allocation5 + $0x148] sm:$0xff]   ;;  %v953_v62 = vld [vmem:[#allocation5 + $0x150] sm:$0xff]   ;;  %v954_v63 = vld [vmem:[#allocation5 + $0x158] sm:$0xff]  }
  0x34   :  { %v955_v1 = vld [vmem:[#allocation5 + $0x160] sm:$0xff]   ;;  %v956_v2 = vld [vmem:[#allocation5 + $0x168] sm:$0xff]   ;;  %v729_v3 = vld [vmem:[%s1178_s2 + $0x3] ss:$0 sm:$0xff] }
  0x35   :  { %818 = vmatpush3.bf16.msra.mxu1 %v922_v7  ;;  %v958_v12 = vld [vmem:[#allocation5 + $0x178] sm:$0xff]  }
  0x36   :  { %819 = vmatprep.subr.bf16.mxu1 %v1039_v0  ;;  %836 = vmatpush3.bf16.msra.mxu0 %v929_v14  ;;  %v739_v13 = vld [vmem:[%s1178_s2 + $0x4] ss:$0 sm:$0xff] }
  0x37   :  { %837 = vmatprep.subr.bf16.mxu0 %v1039_v0 }
  0x39   :  { %820 = vmatpush3.bf16.msra.mxu1 %v923_v8 }
  0x3a   :  { %821 = vmatprep.subr.bf16.mxu1 %v1039_v0  ;;  %838 = vmatpush3.bf16.msra.mxu0 %v930_v15 }
  0x3b   :  { %839 = vmatprep.subr.bf16.mxu0 %v1039_v0 }
  0x3d   :  { %822 = vmatpush3.bf16.msra.mxu1 %v924_v9 }
  0x3e   :  { %823 = vmatprep.subr.bf16.mxu1 %v1039_v0  ;;  %840 = vmatpush3.bf16.msra.mxu0 %v931_v16 }
  0x3f   :  { %841 = vmatprep.subr.bf16.mxu0 %v1039_v0 }
  0x41   :  { %824 = vmatpush3.bf16.msra.mxu1 %v925_v10 }
  0x42   :  { %825 = vmatprep.subr.bf16.mxu1 %v1039_v0  ;;  %842 = vmatpush3.bf16.msra.mxu0 %v932_v17 }
  0x43   :  { %843 = vmatprep.subr.bf16.mxu0 %v1039_v0 }
  0x45   :  { %826 = vmatpush3.bf16.msra.mxu1 %v926_v11  ;;  %v957_v11 = vld [vmem:[#allocation5 + $0x170] sm:$0xff]  }
  0x46   :  { %851 = vmatprep.subr.bf16.mxu1 %v1039_v0  ;;  %844 = vmatpush3.bf16.msra.mxu0 %v933_v26 }
  0x47   :  { %845 = vmatprep.subr.bf16.mxu0 %v1039_v0 }
  0x4a   :  { %846 = vmatpush3.bf16.msra.mxu0 %v934_v27 }
  0x4b   :  { %871 = vmatprep.subr.bf16.mxu0 %v1039_v0 }
  0xff   :  { %v97_v19 = vpop.f32.mrb[0].mxu0 }
 0x100   :  { %v98_v20 = vadd.f32 %v705_v18, %v97_v19  ;;  %v809_v21 = vpop.f32.mrb[1].mxu0 }
 0x101   :  { %v100_v22 = vpop.f32.mrb[2].mxu0  ;;  %v749_v21 = vld [vmem:[%s1178_s2 + $0x5] ss:$0 sm:$0xff]  ;;  %s1007_s2 = scalar_lea.vmem %s696_s22, 64 }
 0x102   :  { %v103_v23 = vmax.f32 %v98_v20, 0.0  ;;  %v810_v24 = vpop.f32.mrb[3].mxu0  ;;  %p1008_p2 = scmp.ne.s32.totalorder %s696_s22, %s1007_s2  ;;  %p1013_p4 = scmp.lt.s32.totalorder %s1007_s2, %s1007_s2 }
 0x104   :  { %v104_v25 = vpack.c.bf16 %v103_v23, %v103_v23  ;;  %p1014_p5 = por %p1013_p4, %p1012_p3 }
 0x106   :  { %828 = vmatmul.mubr.bf16.vlgmr.msra.gmra.mrb[0].mxu1 %v104_v25  ;;  %p1015_p6 = pnand %p1014_p5, %p1008_p2 }
 0x107   :  { %867 = vmatprep.mubr.msk.bf16.mxu1 %vm1040_vm0, %v1039_v0  ;;  %852 = vmatpush3.bf16.msra.mxu1 %v935_v28 }
 0x108   :  { %853 = vmatprep.subr.bf16.mxu1 %v1039_v0 }
 0x10b   :  { %854 = vmatpush3.bf16.msra.mxu1 %v936_v29 }
 0x10c   :  { %855 = vmatprep.subr.bf16.mxu1 %v1039_v0 }
 0x10f   :  { %856 = vmatpush3.bf16.msra.mxu1 %v937_v30 }
 0x110   :  { %857 = vmatprep.subr.bf16.mxu1 %v1039_v0 }
 0x113   :  { %858 = vmatpush3.bf16.msra.mxu1 %v938_v31 }
 0x114   :  { %859 = vmatprep.subr.bf16.mxu1 %v1039_v0 }
 0x117   :  { %860 = vmatpush3.bf16.msra.mxu1 %v939_v32 }
 0x118   :  { %861 = vmatprep.subr.bf16.mxu1 %v1039_v0 }
 0x11b   :  { %862 = vmatpush3.bf16.msra.mxu1 %v940_v33 }
 0x11c   :  { %863 = vmatprep.subr.bf16.mxu1 %v1039_v0 }
 0x11f   :  { %864 = vmatpush3.bf16.msra.mxu1 %v941_v42 }
 0x120   :  { %865 = vmatprep.subr.bf16.mxu1 %v1039_v0 }
 0x123   :  { %866 = vmatpush3.bf16.msra.mxu1 %v942_v43 }
 0x124   :  { %891 = vmatprep.subr.bf16.mxu1 %v1039_v0 }
 0x1d9   :  { %v212_v35 = vpop.f32.mrb[0].mxu1 }
 0x1da   :  { %v213_v36 = vadd.f32 %v709_v34, %v212_v35  ;;  %v829_v37 = vpop.f32.mrb[1].mxu1 }
 0x1db   :  { %v215_v38 = vpop.f32.mrb[2].mxu1 }
 0x1dc   :  { %v218_v39 = vmax.f32 %v213_v36, 0.0  ;;  %v830_v40 = vpop.f32.mrb[3].mxu1 }
 0x1de   :  { %v219_v41 = vpack.c.bf16 %v218_v39, %v218_v39 }
 0x1e0   :  { %848 = vmatmul.mubr.bf16.vlgmr.msra.gmra.mrb[4].mxu0 %v219_v41 }
 0x1e1   :  { %887 = vmatprep.mubr.msk.bf16.mxu0 %vm1040_vm0, %v1039_v0  ;;  %872 = vmatpush3.bf16.msra.mxu0 %v943_v44 }
 0x1e2   :  { %873 = vmatprep.subr.bf16.mxu0 %v1039_v0 }
 0x1e5   :  { %874 = vmatpush3.bf16.msra.mxu0 %v944_v45 }
 0x1e6   :  { %875 = vmatprep.subr.bf16.mxu0 %v1039_v0 }
 0x1e9   :  { %876 = vmatpush3.bf16.msra.mxu0 %v945_v46 }
 0x1ea   :  { %877 = vmatprep.subr.bf16.mxu0 %v1039_v0 }
 0x1ed   :  { %878 = vmatpush3.bf16.msra.mxu0 %v946_v47 }
 0x1ee   :  { %879 = vmatprep.subr.bf16.mxu0 %v1039_v0 }
 0x1f1   :  { %880 = vmatpush3.bf16.msra.mxu0 %v947_v48 }
 0x1f2   :  { %881 = vmatprep.subr.bf16.mxu0 %v1039_v0 }
 0x1f5   :  { %882 = vmatpush3.bf16.msra.mxu0 %v948_v49 }
 0x1f6   :  { %883 = vmatprep.subr.bf16.mxu0 %v1039_v0 }
 0x1f9   :  { %884 = vmatpush3.bf16.msra.mxu0 %v949_v58 }
 0x1fa   :  { %885 = vmatprep.subr.bf16.mxu0 %v1039_v0 }
 0x1fd   :  { %886 = vmatpush3.bf16.msra.mxu0 %v950_v59 }
 0x2b3   :  { %v327_v51 = vpop.f32.mrb[4].mxu0 }
 0x2b4   :  { %v328_v52 = vadd.f32 %v719_v50, %v327_v51  ;;  %v849_v53 = vpop.f32.mrb[5].mxu0 }
 0x2b5   :  { %v330_v54 = vpop.f32.mrb[6].mxu0 }
 0x2b6   :  { %v333_v55 = vmax.f32 %v328_v52, 0.0  ;;  %v850_v56 = vpop.f32.mrb[7].mxu0 }
 0x2b8   :  { %v334_v57 = vpack.c.bf16 %v333_v55, %v333_v55 }
 0x2ba   :  { %868 = vmatmul.mubr.bf16.vlgmr.msra.gmra.mrb[4].mxu1 %v334_v57 }
 0x2bb   :  { %907 = vmatprep.mubr.msk.bf16.mxu1 %vm1040_vm0, %v1039_v0  ;;  %892 = vmatpush3.bf16.msra.mxu1 %v951_v60 }
 0x2bc   :  { %893 = vmatprep.subr.bf16.mxu1 %v1039_v0 }
 0x2bf   :  { %894 = vmatpush3.bf16.msra.mxu1 %v952_v61 }
 0x2c0   :  { %895 = vmatprep.subr.bf16.mxu1 %v1039_v0 }
 0x2c3   :  { %896 = vmatpush3.bf16.msra.mxu1 %v953_v62 }
 0x2c4   :  { %897 = vmatprep.subr.bf16.mxu1 %v1039_v0 }
 0x2c7   :  { %898 = vmatpush3.bf16.msra.mxu1 %v954_v63 }
 0x2c8   :  { %899 = vmatprep.subr.bf16.mxu1 %v1039_v0 }
 0x2cb   :  { %900 = vmatpush3.bf16.msra.mxu1 %v955_v1 }
 0x2cc   :  { %901 = vmatprep.subr.bf16.mxu1 %v1039_v0 }
 0x2cf   :  { %902 = vmatpush3.bf16.msra.mxu1 %v956_v2 }
 0x2d0   :  { %903 = vmatprep.subr.bf16.mxu1 %v1039_v0 }
 0x2d3   :  { %904 = vmatpush3.bf16.msra.mxu1 %v957_v11 }
 0x2d4   :  { %905 = vmatprep.subr.bf16.mxu1 %v1039_v0 }
 0x2d7   :  { %906 = vmatpush3.bf16.msra.mxu1 %v958_v12 }
 0x38d   :  { %v442_v4 = vpop.f32.mrb[4].mxu1 }
 0x38e   :  { %v443_v5 = vadd.f32 %v729_v3, %v442_v4  ;;  %v869_v6 = vpop.f32.mrb[5].mxu1 }
 0x38f   :  { %v445_v7 = vpop.f32.mrb[6].mxu1 }
 0x390   :  { %v448_v8 = vmax.f32 %v443_v5, 0.0  ;;  %v870_v9 = vpop.f32.mrb[7].mxu1 }
 0x392   :  { %v449_v10 = vpack.c.bf16 %v448_v8, %v448_v8 }
 0x394   :  { %888 = vmatmul.mubr.bf16.vlgmr.msra.gmra.mrb[8].mxu0 %v449_v10 }
 0x467   :  { %v557_v14 = vpop.f32.mrb[8].mxu0 }
 0x468   :  { %v558_v15 = vadd.f32 %v739_v13, %v557_v14  ;;  %v889_v16 = vpop.f32.mrb[9].mxu0 }
 0x469   :  { %v560_v17 = vpop.f32.mrb[10].mxu0 }
 0x46a   :  { %v563_v18 = vmax.f32 %v558_v15, 0.0  ;;  %v890_v19 = vpop.f32.mrb[11].mxu0 }
 0x46c   :  { %v564_v20 = vpack.c.bf16 %v563_v18, %v563_v18 }
 0x46e   :  { %908 = vmatmul.mubr.bf16.vlgmr.msra.gmra.mrb[8].mxu1 %v564_v20 }
 0x541   :  { %v672_v22 = vpop.f32.mrb[8].mxu1 }
 0x542   :  { %v673_v0 = vadd.f32 %v749_v21, %v672_v22  ;;  %v909_v23 = vpop.f32.mrb[9].mxu1 }
 0x543   :  { %v675_v24 = vpop.f32.mrb[10].mxu1 }
 0x544   :  { %678 = vmax.xlane.f32.xlu0 %v673_v0  ;;  %v910_v25 = vpop.f32.mrb[11].mxu1 }
 0x5d1   :  { %v679_v26 = vpop.xlane.xlu0 %678 }
 0x5d2   :  { %v680_v27 = vsub.f32 %v673_v0, %v679_v26 }
 0x5d4   :  { %v681_v28 = vmul.f32 1.442695, %v680_v27 }
 0x5d6   :  { %959 = vpow2.f32 %v681_v28 }
 0x5e0   :  { %v960_v29 = vpop.eup %959 }
 0x5e1   :  { %683 = vadd.xlane.f32.xlu0 %v960_v29 }
 0x66e   :  { %v684_v30 = vpop.xlane.xlu0 %683 }
 0x66f   :  { %961 = vrcp.f32 %v684_v30 }
 0x679   :  { %v962_v31 = vpop.eup %961 }
 0x67a   :  { %v686_v32 = vmul.f32 %v962_v31, %v960_v29 }
 0x67c   :  { %v687_v33 = vpack.c.bf16 %v686_v32, %v686_v32 }
 0x67e   :  { %688 = vst [vmem:[#allocation7] sm:$0xf] %v687_v33 }
 0x67f   :  { %1018 = shalt.err (!%p1015_p6)
}
 0x680   :  { %s1019_s25 = scalar_lea.hbm %s1179_s3, 64 }
 0x681   :  { %p1020_p7 = scmp.ne.s32.totalorder %s1179_s3, %s1019_s25  ;;  %p1023_p8 = scmp.lt.u32.totalorder %s1019_s25, %s1179_s3 }
 0x683   :  { %p1025_p9 = pnand %p1023_p8, %p1020_p7 }
 0x685   :  { %1028 = shalt.err (!%p1025_p9)
}
 0x686   :  { %698 = dma.vmem_to_hbm [thread:$0]  %s696_s22, 64, %s1179_s3, [#allocation4]  }
 0x687   :  { %1033 = dma.done.wait [#allocation4], 64  }
 0x688   :  { %1034 = vsyncadd [#allocation4], 4294967232 }
 0x689   :  { %702 = vsyncpa [#allocation3], 1 }
 0x68a   :  { %703 = vsyncpa [#allocation6], 1 }
 0x68b   :  { %704 = vsyncpa [#allocation4], 1 }

</bundles_post_ra>
